<compile_context>
chip_gen: v7x
topology: tpu7x:2x2x1
jax: 0.10.0
libtpu: 0.0.40
codegen_flags: <defaults>
</compile_context>

<pallas_src>
from functools import partial

import jax
import jax.numpy as jnp
from jax.experimental import pallas as pl
from jax.experimental.pallas import tpu as pltpu

H1 = 32      # layer1 first Linear out_features
H2 = 64      # layer1 second Linear out_features
N_OUT = 2    # output classes
N_PAD = 128  # lane-dense padded width for all hidden/output activations


def trolley_kernel(x_ref, w_ref, o_ref, *, d_in_pad):
    # Static, full-tile views into the packed weight slab (8-aligned row
    # offsets, 128-lane width => no masked VMEM loads).
    w1 = w_ref[0:d_in_pad, :]                                  # (d_in_pad, 128)
    w2 = w_ref[d_in_pad:d_in_pad + N_PAD, :]                   # (128, 128)
    w3 = w_ref[d_in_pad + N_PAD:d_in_pad + 2 * N_PAD, :]       # (128, 128)

    x = x_ref[...]                                             # (B, d_in_pad)

    # Linear(d_in -> 32, no bias) + ReLU; cols 32..127 stay exactly zero.
    h1 = jnp.maximum(jnp.dot(x, w1, preferred_element_type=jnp.float32), 0.0)
    # Linear(32 -> 64, no bias) + ReLU; cols 64..127 stay exactly zero.
    h2 = jnp.maximum(jnp.dot(h1, w2, preferred_element_type=jnp.float32), 0.0)
    # Linear(64 -> 2, no bias), padded to 128 lanes (cols 2..127 are zero).
    logits = jnp.dot(h2, w3, preferred_element_type=jnp.float32)  # (B, 128)

    # Softmax over dim=0 (batch axis), numerically stabilized.  Padded logit
    # columns produce harmless 1/B values that never leave the wrapper slice.
    m = jnp.max(logits, axis=0, keepdims=True)
    e = jnp.exp(logits - m)
    s = jnp.sum(e, axis=0, keepdims=True)
    # Approximate reciprocal: EUP slot, effectively free next to the VALU.
    o_ref[...] = e * pl.reciprocal(s, approx=True)


def pack_weights(w1_t, w2_t, w3_t):
    """Pack (in,32), (32,64), (64,2) weights into one (d_in_pad+256, 128)
    f32 slab whose kernel slices are all full (8,128)-tile views."""
    d_in = w1_t.shape[0]
    d_in_pad = max(8, ((d_in + 7) // 8) * 8)
    slab = jnp.zeros((d_in_pad + 2 * N_PAD, N_PAD), dtype=jnp.float32)
    slab = slab.at[0:d_in, 0:H1].set(w1_t.astype(jnp.float32))
    slab = slab.at[d_in_pad:d_in_pad + H1, 0:H2].set(w2_t.astype(jnp.float32))
    slab = slab.at[d_in_pad + N_PAD:d_in_pad + N_PAD + H2, 0:N_OUT].set(
        w3_t.astype(jnp.float32))
    return slab


def trolley_classifier_stacked(xs, packed_w):
    """xs: (N, B, d_in) f32 — N independent forward invocations, amortizing
    the launch over one grid.  packed_w: slab from pack_weights().
    Returns (N, B, 2) f32 == softmax(dim=0) of each call's logits."""
    n_calls, batch, d_in = xs.shape
    d_in_pad = packed_w.shape[0] - 2 * N_PAD
    if d_in < d_in_pad:                       # keep x features 8-aligned too
        xs = jnp.pad(xs, ((0, 0), (0, 0), (0, d_in_pad - d_in)))

    flops = 2 * n_calls * batch * (d_in_pad * N_PAD + N_PAD * N_PAD + N_PAD * N_PAD)
    bytes_accessed = 4 * (xs.size + packed_w.size + n_calls * batch * N_PAD)

    out_padded = pl.pallas_call(
        partial(trolley_kernel, d_in_pad=d_in_pad),
        out_shape=jax.ShapeDtypeStruct((n_calls, batch, N_PAD), jnp.float32),
        grid=(n_calls,),
        in_specs=[
            # One call's activations per grid step.
            pl.BlockSpec((None, batch, d_in_pad), lambda i: (i, 0, 0)),
            # Same block index for every step => 1 weight DMA, slab resident.
            pl.BlockSpec(packed_w.shape, lambda i: (0, 0)),
        ],
        out_specs=pl.BlockSpec((None, batch, N_PAD), lambda i: (i, 0, 0)),
        compiler_params=pltpu.CompilerParams(
            dimension_semantics=("parallel",)),
        cost_estimate=pl.CostEstimate(
            flops=flops,
            transcendentals=n_calls * batch * N_PAD,
            bytes_accessed=bytes_accessed),
    )(xs, packed_w)
    # Slice stays inside the caller's jit region => fused, no extra dispatch.
    return out_padded[..., :N_OUT]


def trolley_classifier(x, packed_w):
    """Single forward call: x (B, d_in) -> (B, 2)."""
    return trolley_classifier_stacked(x[None], packed_w)[0]


def reference(x, w1_t, w2_t, w3_t):
    h1 = jnp.maximum(x @ w1_t, 0.0)
    h2 = jnp.maximum(h1 @ w2_t, 0.0)
    logits = h2 @ w3_t
    return jax.nn.softmax(logits, axis=0)


if __name__ == "__main__":
    num_risk_values = 8          # -> in_features = 16
    batch = 8
    num_calls = 4                # stacked-invocation demo (launch amortization)

    key = jax.random.PRNGKey(0)
    kx, kxs, k1, k2, k3 = jax.random.split(key, 5)

    x = jax.random.normal(kx, (batch, num_risk_values * 2), dtype=jnp.float32)
    xs = jax.random.normal(kxs, (num_calls, batch, num_risk_values * 2),
                           dtype=jnp.float32)
    # Deterministic synthetic weights, stored as (in, out) == PyTorch W^T.
    w1_t = jax.random.normal(k1, (num_risk_values * 2, H1), dtype=jnp.float32) * 0.1
    w2_t = jax.random.normal(k2, (H1, H2), dtype=jnp.float32) * 0.1
    w3_t = jax.random.normal(k3, (H2, N_OUT), dtype=jnp.float32) * 0.1

    # Pack once; the slab is reusable across calls.
    packed_w = pack_weights(w1_t, w2_t, w3_t)

    fwd = jax.jit(trolley_classifier)            # pad + kernel + slice fuse
    fwd_stacked = jax.jit(trolley_classifier_stacked)

    # Single forward call (matches the PyTorch module exactly).
    out = jax.block_until_ready(fwd(x, packed_w))
    ref = reference(x, w1_t, w2_t, w3_t)
    assert out.shape == (batch, N_OUT)
    assert jnp.allclose(out, ref, atol=1e-3, rtol=1e-3), (
        float(jnp.max(jnp.abs(out - ref))))

    # Stacked invocations: one launch, grid=(num_calls,).
    outs = jax.block_until_ready(fwd_stacked(xs, packed_w))
    refs = jax.vmap(lambda xi: reference(xi, w1_t, w2_t, w3_t))(xs)
    assert outs.shape == (num_calls, batch, N_OUT)
    assert jnp.allclose(outs, refs, atol=1e-3, rtol=1e-3), (
        float(jnp.max(jnp.abs(outs - refs))))

    print("KERNEL_OK")
</pallas_src>

<mosaic_0001>
module attributes {stable_mosaic.version = 11 : i64} {
  func.func @trolley_kernel(%arg0: i32, %arg1: memref<1x8x16xf32, #tpu.memory_space<vmem>>, %arg2: memref<272x128xf32, #tpu.memory_space<vmem>>, %arg3: memref<1x8x128xf32, #tpu.memory_space<vmem>>) attributes {dimension_semantics = [#tpu.dimension_semantics<parallel>], iteration_bounds = array<i64: 1>, scalar_prefetch = 0 : i64, scratch_operands = 0 : i64, tpu.core_type = #tpu.core_type<tc>, window_params = [{transform_indices = @transform_0, window_bounds = array<i64: 1, 8, 16>}, {pipeline_mode = #tpu.pipeline_mode<synchronous>, transform_indices = @transform_1, window_bounds = array<i64: 272, 128>}, {transform_indices = @transform_2, window_bounds = array<i64: 1, 8, 128>}]} {
    %c0 = arith.constant 0 : index
    %c0_0 = arith.constant 0 : index
    %0 = vector.load %arg2[%c0, %c0_0] : memref<272x128xf32, #tpu.memory_space<vmem>>, vector<16x128xf32>
    %c16 = arith.constant 16 : index
    %c0_1 = arith.constant 0 : index
    %1 = vector.load %arg2[%c16, %c0_1] : memref<272x128xf32, #tpu.memory_space<vmem>>, vector<128x128xf32>
    %c144 = arith.constant 144 : index
    %c0_2 = arith.constant 0 : index
    %2 = vector.load %arg2[%c144, %c0_2] : memref<272x128xf32, #tpu.memory_space<vmem>>, vector<128x128xf32>
    %c0_3 = arith.constant 0 : index
    %c0_4 = arith.constant 0 : index
    %c0_5 = arith.constant 0 : index
    %3 = vector.load %arg1[%c0_3, %c0_4, %c0_5] : memref<1x8x16xf32, #tpu.memory_space<vmem>>, vector<1x8x16xf32>
    %4 = vector.shape_cast %3 : vector<1x8x16xf32> to vector<8x16xf32>
    %cst = arith.constant dense<0.000000e+00> : vector<8x128xf32>
    %5 = tpu.matmul %4, %0, %cst {dimension_numbers = #tpu.dot_dimension_numbers<[1], [0], [0], [1], [0, 0, 1, 1], [], []>} : vector<8x16xf32>, vector<16x128xf32>, vector<8x128xf32> -> vector<8x128xf32>
    %cst_6 = arith.constant 0.000000e+00 : f32
    %6 = vector.broadcast %cst_6 : f32 to vector<8x128xf32>
    %7 = arith.maximumf %5, %6 : vector<8x128xf32>
    %cst_7 = arith.constant dense<0.000000e+00> : vector<8x128xf32>
    %8 = tpu.matmul %7, %1, %cst_7 {dimension_numbers = #tpu.dot_dimension_numbers<[1], [0], [0], [1], [0, 0, 1, 1], [], []>} : vector<8x128xf32>, vector<128x128xf32>, vector<8x128xf32> -> vector<8x128xf32>
    %cst_8 = arith.constant 0.000000e+00 : f32
    %9 = vector.broadcast %cst_8 : f32 to vector<8x128xf32>
    %10 = arith.maximumf %8, %9 : vector<8x128xf32>
    %cst_9 = arith.constant dense<0.000000e+00> : vector<8x128xf32>
    %11 = tpu.matmul %10, %2, %cst_9 {dimension_numbers = #tpu.dot_dimension_numbers<[1], [0], [0], [1], [0, 0, 1, 1], [], []>} : vector<8x128xf32>, vector<128x128xf32>, vector<8x128xf32> -> vector<8x128xf32>
    %cst_10 = arith.constant dense<0xFF800000> : vector<128xf32>
    %12 = vector.multi_reduction <maximumf>, %11, %cst_10 [0] : vector<8x128xf32> to vector<128xf32>
    %13 = vector.shape_cast %12 : vector<128xf32> to vector<1x128xf32>
    %14 = vector.broadcast %13 : vector<1x128xf32> to vector<8x128xf32>
    %15 = arith.subf %11, %14 : vector<8x128xf32>
    %16 = math.exp %15 : vector<8x128xf32>
    %cst_11 = arith.constant dense<0.000000e+00> : vector<128xf32>
    %17 = vector.multi_reduction <add>, %16, %cst_11 [0] : vector<8x128xf32> to vector<128xf32>
    %18 = vector.shape_cast %17 : vector<128xf32> to vector<1x128xf32>
    %19 = tpu.reciprocal %18 {approx = true} : vector<1x128xf32> -> vector<1x128xf32>
    %20 = vector.broadcast %19 : vector<1x128xf32> to vector<8x128xf32>
    %21 = arith.mulf %16, %20 : vector<8x128xf32>
    %c0_12 = arith.constant 0 : index
    %c0_13 = arith.constant 0 : index
    %c0_14 = arith.constant 0 : index
    %22 = vector.load %arg3[%c0_12, %c0_13, %c0_14] : memref<1x8x128xf32, #tpu.memory_space<vmem>>, vector<1x8x128xf32>
    %23 = vector.shape_cast %22 : vector<1x8x128xf32> to vector<8x128xf32>
    %24 = vector.shape_cast %21 : vector<8x128xf32> to vector<1x8x128xf32>
    tpu.vector_store %arg3[%c0_12, %c0_13, %c0_14], %24 {strides = array<i32>} : memref<1x8x128xf32, #tpu.memory_space<vmem>>, vector<1x8x128xf32>,
    return
  }
  func.func @transform_0(%arg0: i32) -> (i32, i32, i32) {
    %c0_i32 = arith.constant 0 : i32
    %c0_i32_0 = arith.constant 0 : i32
    %c0_i32_1 = arith.constant 0 : i32
    return %arg0, %c0_i32, %c0_i32_0 : i32, i32, i32
  }
  func.func @transform_1(%arg0: i32) -> (i32, i32) {
    %c0_i32 = arith.constant 0 : i32
    %c0_i32_0 = arith.constant 0 : i32
    %c0_i32_1 = arith.constant 0 : i32
    return %c0_i32, %c0_i32_0 : i32, i32
  }
  func.func @transform_2(%arg0: i32) -> (i32, i32, i32) {
    %c0_i32 = arith.constant 0 : i32
    %c0_i32_0 = arith.constant 0 : i32
    %c0_i32_1 = arith.constant 0 : i32
    return %arg0, %c0_i32, %c0_i32_0 : i32, i32, i32
  }
}

</mosaic_0001>

<bundles_post_ra>
// kernel: trolley_classifier.1
= control target key start
LH: loop header
LB: loop body
LE: loop exit
PB: predicated region body
PF: predicated region fallthrough
CT: control target
= control target key end

     0   :  { %7 = vsyncpa [#allocation3], 0  ;;  %s613_s0 = inlined_call_operand.hbm [shape: f32[1,8,16], index: 0, kind: input, shape index: {}]   ;;  %s614_s1 = inlined_call_operand.hbm [shape: f32[272,128], index: 1, kind: input, shape index: {}]   ;;  %s615_s2 = inlined_call_operand.vmem [shape: f32[1,8,128], index: 2, kind: output, shape index: {}]  }
   0x1   :  { %8 = vsyncpa [#allocation5], 0  ;;  %s537_s9 = smov [#allocation2]   ;;  %s538_s11 = smov [#allocation4]  }
   0x2   :  { %s15_s10 = sshll.u32 %s537_s9, 4  ;;  %s24_s12 = sshll.u32 %s538_s11, 4  ;;  %s16_s10 = int_to_ptr.vmem [resolvable:$true] %s15_s10  ;;  %s559_s12 = int_to_ptr.vmem [resolvable:$true] %s24_s12 }
   0x3   :  { %s489_s15 = scalar_lea.hbm %s613_s0, 128 }
   0x4   :  { %p490_p0 = scmp.ne.s32.totalorder %s613_s0, %s489_s15  ;;  %p493_p1 = scmp.lt.u32.totalorder %s489_s15, %s613_s0 }
   0x6   :  { %p495_p2 = pnand %p493_p1, %p490_p0 }
   0x8   :  { %498 = shalt.err (!%p495_p2)
}
   0x9   :  { %s499_s20 = scalar_lea.vmem %s16_s10, 128  ;;  %p504_p4 = scmp.lt.s32.totalorder %s16_s10, %s16_s10 }
   0xa   :  { %p500_p3 = scmp.ne.s32.totalorder %s16_s10, %s499_s20  ;;  %p505_p5 = scmp.lt.s32.totalorder %s499_s20, %s499_s20 }
   0xc   :  { %p506_p6 = por %p505_p5, %p504_p4 }
   0xe   :  { %p507_p7 = pnand %p506_p6, %p500_p3 }
  0x10   :  { %510 = shalt.err (!%p507_p7)
}
  0x11   :  { %18 = dma.hbm_to_vmem [thread:$0]  %s613_s0, 128, %s16_s10, [#allocation3]  }
  0x12   :  { %s511_s25 = scalar_lea.hbm %s614_s1, 4352 }
  0x13   :  { %p512_p8 = scmp.ne.s32.totalorder %s614_s1, %s511_s25  ;;  %p515_p9 = scmp.lt.u32.totalorder %s511_s25, %s614_s1 }
  0x15   :  { %p517_p10 = pnand %p515_p9, %p512_p8 }
  0x17   :  { %520 = shalt.err (!%p517_p10)
}
  0x18   :  { %s521_s30 = scalar_lea.vmem %s559_s12, 4352  ;;  %p526_p12 = scmp.lt.s32.totalorder %s559_s12, %s559_s12 }
  0x19   :  { %p522_p11 = scmp.ne.s32.totalorder %s559_s12, %s521_s30  ;;  %p527_p13 = scmp.lt.s32.totalorder %s521_s30, %s521_s30 }
  0x1b   :  { %p528_p0 = por %p527_p13, %p526_p12 }
  0x1d   :  { %p529_p1 = pnand %p528_p0, %p522_p11 }
  0x1f   :  { %532 = shalt.err (!%p529_p1)
}
  0x20   :  { %s539_s0 = smov 128   ;;  %s540_s3 = smov 8  }
  0x21   :  { %30 = dma.hbm_to_vmem [thread:$0]  %s614_s1, 4352, %s559_s12, [#allocation5], %s539_s0, %s539_s0, %s540_s3  }
  0x22   :  { %533 = dma.done.wait [#allocation3], 128  }
  0x23   :  { %534 = vsyncadd [#allocation3], 4294967168 }
  0x24   :  { %535 = dma.done.wait [#allocation5], 4352  }
  0x25   :  { %536 = vsyncadd [#allocation5], 4294962944  ;;  %v541_v0 = vmov 0.0|0.0   ;;  %vm542_vm0 = vmmov 0   ;;  %v543_v1 = vmov 0.0   ;;  %v37_v2 = vld [vmem:[#allocation4] sm:$0xff] }
  0x26   :  { %427 = vmatprep.subr.bf16.mxu0 %v541_v0  ;;  %354 = vmatprep.mubr.msk.f32.mxu0 %vm542_vm0, %v543_v1  ;;  %v38_v3 = vld [vmem:[#allocation4 + $0x8] sm:$0xff]  ;;  %v39_v5 = vld [vmem:[#allocation4 + $0x10] sm:$0xff]  ;;  %v40_v6 = vld [vmem:[#allocation4 + $0x18] sm:$0xff]  ;;  %vm72_vm1 = vcmask 130048  }
  0x27   :  { %430 = vmatprep.subr.bf16.mxu1 %v541_v0  ;;  %389 = vmatprep.mubr.msk.f32.mxu1 %vm542_vm0, %v543_v1  ;;  %v428_v4 = vpack.c.bf16 %v38_v3, %v37_v2  ;;  %v41_v7 = vld [vmem:[#allocation4 + $0x20] sm:$0xff]  ;;  %v431_v8 = vpack.c.bf16 %v40_v6, %v39_v5  ;;  %v42_v9 = vld [vmem:[#allocation4 + $0x28] sm:$0xff]  ;;  %v71_v10 = vld [vmem:[#allocation2] sm:$0xff] }
  0x28   :  { %v434_v11 = vpack.c.bf16 %v42_v9, %v41_v7  ;;  %v43_v12 = vld [vmem:[#allocation4 + $0x30] sm:$0xff]  ;;  %v44_v13 = vld [vmem:[#allocation4 + $0x38] sm:$0xff]  ;;  %v45_v15 = vld [vmem:[#allocation4 + $0x40] sm:$0xff] }
  0x29   :  { %429 = vmatpush3.bf16.msra.mxu0 %v428_v4  ;;  %432 = vmatpush3.bf16.msra.mxu1 %v431_v8  ;;  %v437_v14 = vpack.c.bf16 %v44_v13, %v43_v12  ;;  %v46_v16 = vld [vmem:[#allocation4 + $0x48] sm:$0xff]  ;;  %v47_v18 = vld [vmem:[#allocation4 + $0x50] sm:$0xff]  ;;  %v48_v19 = vld [vmem:[#allocation4 + $0x58] sm:$0xff] }
  0x2a   :  { %454 = vmatprep.subr.bf16.mxu0 %v541_v0  ;;  %433 = vmatprep.subr.bf16.mxu1 %v541_v0  ;;  %v440_v17 = vpack.c.bf16 %v46_v16, %v45_v15  ;;  %v443_v20 = vpack.c.bf16 %v48_v19, %v47_v18  ;;  %v49_v21 = vld [vmem:[#allocation4 + $0x60] sm:$0xff]  ;;  %v50_v22 = vld [vmem:[#allocation4 + $0x68] sm:$0xff]  ;;  %v51_v24 = vld [vmem:[#allocation4 + $0x70] sm:$0xff] }
  0x2b   :  { %v446_v23 = vpack.c.bf16 %v50_v22, %v49_v21  ;;  %v52_v25 = vld [vmem:[#allocation4 + $0x78] sm:$0xff]  ;;  %v53_v27 = vld [vmem:[#allocation4 + $0x80] sm:$0xff]  ;;  %v54_v28 = vld [vmem:[#allocation4 + $0x88] sm:$0xff] }
  0x2c   :  { %355 = vmatmul.mubr.msk.f32.vlgmr.msra.gmra.mrb[0].mxu0 %vm72_vm1, %v71_v10  ;;  %v449_v26 = vpack.c.bf16 %v52_v25, %v51_v24  ;;  %v452_v29 = vpack.c.bf16 %v54_v28, %v53_v27  ;;  %v55_v30 = vld [vmem:[#allocation4 + $0x90] sm:$0xff]  ;;  %v56_v31 = vld [vmem:[#allocation4 + $0x98] sm:$0xff]  ;;  %v57_v32 = vld [vmem:[#allocation4 + $0xa0] sm:$0xff] }
  0x2d   :  { %424 = vmatprep.mubr.msk.f32.mxu0 %vm542_vm0, %v543_v1  ;;  %435 = vmatpush3.bf16.msra.mxu1 %v434_v11  ;;  %v455_v33 = vpack.c.bf16 %v56_v31, %v55_v30  ;;  %v58_v34 = vld [vmem:[#allocation4 + $0xa8] sm:$0xff]  ;;  %v59_v36 = vld [vmem:[#allocation4 + $0xb0] sm:$0xff]  ;;  %v60_v37 = vld [vmem:[#allocation4 + $0xb8] sm:$0xff] }
  0x2e   :  { %436 = vmatprep.subr.bf16.mxu1 %v541_v0  ;;  %v458_v35 = vpack.c.bf16 %v58_v34, %v57_v32  ;;  %v461_v38 = vpack.c.bf16 %v60_v37, %v59_v36  ;;  %v61_v39 = vld [vmem:[#allocation4 + $0xc0] sm:$0xff]  ;;  %v62_v40 = vld [vmem:[#allocation4 + $0xc8] sm:$0xff]  ;;  %v63_v42 = vld [vmem:[#allocation4 + $0xd0] sm:$0xff] }
  0x2f   :  { %456 = vmatpush3.bf16.msra.mxu0 %v455_v33  ;;  %v464_v41 = vpack.c.bf16 %v62_v40, %v61_v39  ;;  %v64_v43 = vld [vmem:[#allocation4 + $0xd8] sm:$0xff]  ;;  %v65_v45 = vld [vmem:[#allocation4 + $0xe0] sm:$0xff]  ;;  %v66_v46 = vld [vmem:[#allocation4 + $0xe8] sm:$0xff] }
  0x30   :  { %457 = vmatprep.subr.bf16.mxu0 %v541_v0  ;;  %v467_v44 = vpack.c.bf16 %v64_v43, %v63_v42  ;;  %v470_v47 = vpack.c.bf16 %v66_v46, %v65_v45  ;;  %v67_v48 = vld [vmem:[#allocation4 + $0xf0] sm:$0xff]  ;;  %v68_v49 = vld [vmem:[#allocation4 + $0xf8] sm:$0xff]  ;;  %v69_v54 = vld [vmem:[#allocation4 + $0x100] sm:$0xff] }
  0x31   :  { %438 = vmatpush3.bf16.msra.mxu1 %v437_v14  ;;  %v473_v50 = vpack.c.bf16 %v68_v49, %v67_v48  ;;  %v70_v55 = vld [vmem:[#allocation4 + $0x108] sm:$0xff] }
  0x32   :  { %439 = vmatprep.subr.bf16.mxu1 %v541_v0  ;;  %v476_v56 = vpack.c.bf16 %v70_v55, %v69_v54 }
  0x33   :  { %459 = vmatpush3.bf16.msra.mxu0 %v458_v35 }
  0x34   :  { %460 = vmatprep.subr.bf16.mxu0 %v541_v0 }
  0x35   :  { %441 = vmatpush3.bf16.msra.mxu1 %v440_v17 }
  0x36   :  { %442 = vmatprep.subr.bf16.mxu1 %v541_v0 }
  0x37   :  { %462 = vmatpush3.bf16.msra.mxu0 %v461_v38 }
  0x38   :  { %463 = vmatprep.subr.bf16.mxu0 %v541_v0 }
  0x39   :  { %444 = vmatpush3.bf16.msra.mxu1 %v443_v20 }
  0x3a   :  { %445 = vmatprep.subr.bf16.mxu1 %v541_v0 }
  0x3b   :  { %465 = vmatpush3.bf16.msra.mxu0 %v464_v41 }
  0x3c   :  { %466 = vmatprep.subr.bf16.mxu0 %v541_v0 }
  0x3d   :  { %447 = vmatpush3.bf16.msra.mxu1 %v446_v23 }
  0x3e   :  { %448 = vmatprep.subr.bf16.mxu1 %v541_v0 }
  0x3f   :  { %468 = vmatpush3.bf16.msra.mxu0 %v467_v44 }
  0x40   :  { %469 = vmatprep.subr.bf16.mxu0 %v541_v0 }
  0x41   :  { %450 = vmatpush3.bf16.msra.mxu1 %v449_v26 }
  0x42   :  { %451 = vmatprep.subr.bf16.mxu1 %v541_v0 }
  0x43   :  { %471 = vmatpush3.bf16.msra.mxu0 %v470_v47 }
  0x44   :  { %472 = vmatprep.subr.bf16.mxu0 %v541_v0 }
  0x45   :  { %453 = vmatpush3.bf16.msra.mxu1 %v452_v29 }
  0x47   :  { %474 = vmatpush3.bf16.msra.mxu0 %v473_v50 }
  0x48   :  { %475 = vmatprep.subr.bf16.mxu0 %v541_v0 }
  0x4b   :  { %477 = vmatpush3.bf16.msra.mxu0 %v476_v56 }
  0xff   :  { %v142_v51 = vpop.f32.mrb[0].mxu0 }
 0x100   :  { %v146_v52 = vmax.f32 %v142_v51, 0.0  ;;  %v356_v53 = vpop.f32.mrb[1].mxu0 }
 0x102   :  { %390 = vmatmul.mubr.f32.vlgmr.msra.gmra.mrb[0].mxu1 %v146_v52 }
 0x1d5   :  { %v213_v57 = vpop.f32.mrb[0].mxu1 }
 0x1d6   :  { %v217_v58 = vmax.f32 %v213_v57, 0.0  ;;  %v391_v59 = vpop.f32.mrb[1].mxu1 }
 0x1d8   :  { %425 = vmatmul.mubr.f32.vlgmr.msra.gmra.mrb[2].mxu0 %v217_v58 }
 0x2ab   :  { %v284_v60 = vpop.f32.mrb[2].mxu0 }
 0x2ac   :  { %v288_v61 = vrot.slane %v284_v60, 4  ;;  %v426_v62 = vpop.f32.mrb[3].mxu0 }
 0x2ae   :  { %v289_v63 = vmax.f32 %v284_v60, %v288_v61 }
 0x2b0   :  { %v290_v1 = vrot.slane %v289_v63, 2 }
 0x2b2   :  { %v291_v2 = vmax.f32 %v289_v63, %v290_v1 }
 0x2b4   :  { %v292_v3 = vrot.slane %v291_v2, 1 }
 0x2b6   :  { %v293_v0 = vmax.f32 %v291_v2, %v292_v3 }
 0x2b8   :  { %v294_v4 = vsub.f32 %v284_v60, %v293_v0 }
 0x2ba   :  { %v295_v5 = vmul.f32 1.442695, %v294_v4 }
 0x2bc   :  { %485 = vpow2.f32 %v295_v5 }
 0x2c6   :  { %v486_v6 = vpop.eup %485 }
 0x2c7   :  { %v297_v7 = vrot.slane %v486_v6, 4 }
 0x2c9   :  { %v298_v8 = vadd.f32 %v486_v6, %v297_v7 }
 0x2cb   :  { %v299_v9 = vrot.slane %v298_v8, 2 }
 0x2cd   :  { %v300_v10 = vadd.f32 %v299_v9, %v298_v8 }
 0x2cf   :  { %v301_v11 = vrot.slane %v300_v10, 1 }
 0x2d1   :  { %v302_v12 = vadd.f32 %v301_v11, %v300_v10 }
 0x2d3   :  { %487 = vrcp.f32 %v302_v12 }
 0x2dd   :  { %v488_v13 = vpop.eup %487 }
 0x2de   :  { %v304_v14 = vmul.f32 %v488_v13, %v486_v6 }
 0x2e0   :  { %305 = vst [vmem:[%s615_s2] sm:$0xff] %v304_v14 }
 0x2e1   :  { %310 = vsyncpa [#allocation3], 1 }
 0x2e2   :  { %311 = vsyncpa [#allocation5], 1 }

</bundles_post_ra>
